<compile_context>
chip_gen: v7x
topology: tpu7x:2x2x1
jax: 0.10.0
libtpu: 0.0.40
codegen_flags: <defaults>
</compile_context>

<pallas_src>
import functools

import jax
import jax.numpy as jnp
from jax import lax
from jax.experimental import pallas as pl
from jax.experimental.pallas import tpu as pltpu

EPS = 1e-5
LANES = 128
HIDDEN_DIMS = (64, 32, 16)

# Row layout of the packed per-feature vector buffer (vpack), shape (16, lane_dim):
#   rows 0..5  : biases  b0..b5   (only rows 2 and 5 are read by the kernel)
#   rows 6..9  : BN gammas        (after Linear layers 0, 1, 3, 4)
#   rows 10..13: BN betas         (after Linear layers 0, 1, 3, 4)
#   rows 14..15: zero padding (sublane alignment)
_B_ROWS = (0, 1, 2, 3, 4, 5)
_G_ROWS = (6, 7, 8, 9)
_BE_ROWS = (10, 11, 12, 13)
_N_VEC_ROWS = 16


def _round_up(n, m):
    return ((n + m - 1) // m) * m


def _layer_dims(input_dim, hidden_dims=HIDDEN_DIMS):
    """(fan_in, fan_out) of the 6 Linear layers, matching the PyTorch module."""
    h0, h1, h2 = hidden_dims
    return [(input_dim, h0), (h0, h1), (h1, h2),     # encoder
            (h2, h1), (h1, h0), (h0, input_dim)]     # decoder


def _w_offsets(shapes):
    """Static sublane row offsets of each ragged-packed weight block."""
    offs, rows = [], 0
    for fi, _ in shapes:
        offs.append(rows)
        rows += _round_up(fi, 8)
    return offs, rows


# ----------------------------- kernel ---------------------------------------

def make_autoencoder_kernel(shapes, w_offs, out_dim):
    def kernel(x_ref, w_ref, v_ref, out_ref):
        batch = x_ref.shape[0]
        inv_b = jnp.float32(1.0 / batch)
        ones_row = jnp.ones((1, batch), jnp.float32)   # hoisted; reused by every BN layer

        def matmul(h, layer):
            fi, _ = shapes[layer]
            off = w_offs[layer]
            w = w_ref[off:off + fi, :]                 # (fi, lane_dim) static slice
            hk = h if h.shape[1] == fi else h[:, :fi]  # contract only the real features
            return jnp.dot(hk, w, preferred_element_type=jnp.float32)

        def bias(layer):
            return v_ref[_B_ROWS[layer]:_B_ROWS[layer] + 1, :]

        def bn_relu(z, bn_idx):
            # Training-mode BN (full-batch mean, biased variance, eps=1e-5) as a fused
            # scale/shift. Stats come from two MXU dots (sum, sum-of-squares) instead of
            # XLU cross-sublane reductions.
            g = v_ref[_G_ROWS[bn_idx]:_G_ROWS[bn_idx] + 1, :]
            be = v_ref[_BE_ROWS[bn_idx]:_BE_ROWS[bn_idx] + 1, :]
            s1 = jnp.dot(ones_row, z, preferred_element_type=jnp.float32)        # (1, L)
            s2 = jnp.dot(ones_row, z * z, preferred_element_type=jnp.float32)    # (1, L)
            mean = s1 * inv_b
            var = jnp.maximum(s2 * inv_b - mean * mean, 0.0)                     # biased
            scale = g * lax.rsqrt(var + EPS)
            shift = be - mean * scale
            return jnp.maximum(z * scale + shift, 0.0)

        x = x_ref[...].astype(jnp.float32)

        # ---- encoder ---- (biases of BN-followed linears dropped: cancelled by BN mean)
        h = bn_relu(matmul(x, 0), 0)
        h = bn_relu(matmul(h, 1), 1)
        h = matmul(h, 2) + bias(2)                     # latent (no BN/ReLU)

        # ---- decoder ----
        h = bn_relu(matmul(h, 3), 2)
        h = bn_relu(matmul(h, 4), 3)
        h = matmul(h, 5) + bias(5)                     # reconstruction

        out_ref[...] = h[:, :out_dim].astype(out_ref.dtype)

    return kernel


# ----------------------------- params ---------------------------------------

def init_params(key, input_dim, hidden_dims=HIDDEN_DIMS):
    """PyTorch-default-like init. Weights are (in_features, out_features)."""
    shapes = _layer_dims(input_dim, hidden_dims)
    bn_dims = [hidden_dims[0], hidden_dims[1], hidden_dims[1], hidden_dims[0]]

    keys = jax.random.split(key, len(shapes))
    linears = []
    for k, (fan_in, fan_out) in zip(keys, shapes):
        kw, kb = jax.random.split(k)
        bound = 1.0 / (fan_in ** 0.5)
        w = jax.random.uniform(kw, (fan_in, fan_out), jnp.float32, -bound, bound)
        b = jax.random.uniform(kb, (fan_out,), jnp.float32, -bound, bound)
        linears.append((w, b))

    bns = [(jnp.ones((d,), jnp.float32), jnp.zeros((d,), jnp.float32)) for d in bn_dims]
    return linears, bns


def pack_params(linears, bns, input_dim, hidden_dims=HIDDEN_DIMS):
    """Ragged-pack weights along sublanes: (sum round_up(fan_in,8), lane_dim) f32,
    plus a (16, lane_dim) buffer of biases/gammas/betas."""
    shapes = _layer_dims(input_dim, hidden_dims)
    lane_dim = _round_up(max(input_dim, *hidden_dims), LANES)
    offs, total_rows = _w_offsets(shapes)

    wpack = jnp.zeros((total_rows, lane_dim), jnp.float32)
    vpack = jnp.zeros((_N_VEC_ROWS, lane_dim), jnp.float32)
    for i, (w, b) in enumerate(linears):
        fi, fo = w.shape
        wpack = wpack.at[offs[i]:offs[i] + fi, :fo].set(w)
        vpack = vpack.at[_B_ROWS[i], :fo].set(b)
    for j, (g, be) in enumerate(bns):
        d = g.shape[0]
        vpack = vpack.at[_G_ROWS[j], :d].set(g)
        vpack = vpack.at[_BE_ROWS[j], :d].set(be)
    return wpack, vpack


# ----------------------------- wrapper ---------------------------------------

@functools.partial(jax.jit, static_argnames=("hidden_dims",))
def autoencoder_forward(x, wpack, vpack, hidden_dims=HIDDEN_DIMS):
    batch, d = x.shape
    lane_dim = wpack.shape[-1]
    shapes = _layer_dims(d, hidden_dims)
    w_offs, _ = _w_offsets(shapes)

    # VMEM budget: params + in/out + live (B, lane_dim) f32 intermediates (+ headroom),
    # capped at 64 MiB so the same config stays within v7x physical VMEM.
    live_rows = 12 * batch * lane_dim * 4
    est = wpack.size * 4 + vpack.size * 4 + 2 * (batch * d * 4) + live_rows
    vmem_limit = int(min(max(2 * est, 16 * 1024 * 1024), 64 * 1024 * 1024))

    kernel = make_autoencoder_kernel(shapes, w_offs, d)
    return pl.pallas_call(
        kernel,
        out_shape=jax.ShapeDtypeStruct((batch, d), x.dtype),
        in_specs=[pl.BlockSpec(memory_space=pltpu.MemorySpace.VMEM)] * 3,
        out_specs=pl.BlockSpec(memory_space=pltpu.MemorySpace.VMEM),
        compiler_params=pltpu.CompilerParams(vmem_limit_bytes=vmem_limit),
    )(x, wpack, vpack)


# Pure-JAX reference (exact PyTorch training-mode forward) for a sanity check.
def reference_forward(x, linears, bns):
    def lin(h, wb):
        w, b = wb
        return h @ w + b

    def bn(h, gb):
        g, be = gb
        m = jnp.mean(h, axis=0, keepdims=True)
        v = jnp.mean((h - m) ** 2, axis=0, keepdims=True)
        return g * (h - m) / jnp.sqrt(v + EPS) + be

    h = jax.nn.relu(bn(lin(x, linears[0]), bns[0]))
    h = jax.nn.relu(bn(lin(h, linears[1]), bns[1]))
    h = lin(h, linears[2])
    h = jax.nn.relu(bn(lin(h, linears[3]), bns[2]))
    h = jax.nn.relu(bn(lin(h, linears[4]), bns[3]))
    return lin(h, linears[5])


if __name__ == "__main__":
    key = jax.random.PRNGKey(0)
    k_params, k_x = jax.random.split(key)

    batch, input_dim = 8, 32
    linears, bns = init_params(k_params, input_dim, HIDDEN_DIMS)
    wpack, vpack = pack_params(linears, bns, input_dim, HIDDEN_DIMS)

    x = jax.random.normal(k_x, (batch, input_dim), jnp.float32)

    out = jax.block_until_ready(autoencoder_forward(x, wpack, vpack))

    ref = reference_forward(x, linears, bns)
    assert out.shape == (batch, input_dim), out.shape
    assert jnp.allclose(out, ref, atol=1e-4, rtol=1e-4), "mismatch vs reference"

    print("KERNEL_OK")
</pallas_src>

<mosaic_0001>
module attributes {stable_mosaic.version = 11 : i64} {
  func.func @kernel(%arg0: memref<8x32xf32, #tpu.memory_space<vmem>>, %arg1: memref<240x128xf32, #tpu.memory_space<vmem>>, %arg2: memref<16x128xf32, #tpu.memory_space<vmem>>, %arg3: memref<8x32xf32, #tpu.memory_space<vmem>>) attributes {dimension_semantics = [], scalar_prefetch = 0 : i64, scratch_operands = 0 : i64, tpu.core_type = #tpu.core_type<tc>} {
    %cst = arith.constant 1.000000e+00 : f32
    %0 = vector.broadcast %cst : f32 to vector<1x8xf32>
    %c0 = arith.constant 0 : index
    %c0_0 = arith.constant 0 : index
    %1 = vector.load %arg0[%c0, %c0_0] : memref<8x32xf32, #tpu.memory_space<vmem>>, vector<8x32xf32>
    %c0_1 = arith.constant 0 : index
    %c0_2 = arith.constant 0 : index
    %2 = vector.load %arg1[%c0_1, %c0_2] : memref<240x128xf32, #tpu.memory_space<vmem>>, vector<32x128xf32>
    %cst_3 = arith.constant dense<0.000000e+00> : vector<8x128xf32>
    %3 = tpu.matmul %1, %2, %cst_3 {dimension_numbers = #tpu.dot_dimension_numbers<[1], [0], [0], [1], [0, 0, 1, 1], [], []>} : vector<8x32xf32>, vector<32x128xf32>, vector<8x128xf32> -> vector<8x128xf32>
    %c6 = arith.constant 6 : index
    %c0_4 = arith.constant 0 : index
    %4 = vector.load %arg2[%c6, %c0_4] : memref<16x128xf32, #tpu.memory_space<vmem>>, vector<1x128xf32>
    %c10 = arith.constant 10 : index
    %c0_5 = arith.constant 0 : index
    %5 = vector.load %arg2[%c10, %c0_5] : memref<16x128xf32, #tpu.memory_space<vmem>>, vector<1x128xf32>
    %cst_6 = arith.constant dense<0.000000e+00> : vector<1x128xf32>
    %6 = tpu.matmul %0, %3, %cst_6 {dimension_numbers = #tpu.dot_dimension_numbers<[1], [0], [0], [1], [0, 0, 1, 1], [], []>} : vector<1x8xf32>, vector<8x128xf32>, vector<1x128xf32> -> vector<1x128xf32>
    %7 = arith.mulf %3, %3 : vector<8x128xf32>
    %cst_7 = arith.constant dense<0.000000e+00> : vector<1x128xf32>
    %8 = tpu.matmul %0, %7, %cst_7 {dimension_numbers = #tpu.dot_dimension_numbers<[1], [0], [0], [1], [0, 0, 1, 1], [], []>} : vector<1x8xf32>, vector<8x128xf32>, vector<1x128xf32> -> vector<1x128xf32>
    %cst_8 = arith.constant 1.250000e-01 : f32
    %9 = vector.broadcast %cst_8 : f32 to vector<1x128xf32>
    %10 = arith.mulf %6, %9 : vector<1x128xf32>
    %cst_9 = arith.constant 1.250000e-01 : f32
    %11 = vector.broadcast %cst_9 : f32 to vector<1x128xf32>
    %12 = arith.mulf %8, %11 : vector<1x128xf32>
    %13 = arith.mulf %10, %10 : vector<1x128xf32>
    %14 = arith.subf %12, %13 : vector<1x128xf32>
    %cst_10 = arith.constant 0.000000e+00 : f32
    %15 = vector.broadcast %cst_10 : f32 to vector<1x128xf32>
    %16 = arith.maximumf %14, %15 : vector<1x128xf32>
    %cst_11 = arith.constant 9.99999974E-6 : f32
    %17 = vector.broadcast %cst_11 : f32 to vector<1x128xf32>
    %18 = arith.addf %16, %17 : vector<1x128xf32>
    %19 = math.rsqrt %18 : vector<1x128xf32>
    %20 = arith.mulf %4, %19 : vector<1x128xf32>
    %21 = arith.mulf %10, %20 : vector<1x128xf32>
    %22 = arith.subf %5, %21 : vector<1x128xf32>
    %23 = vector.broadcast %20 : vector<1x128xf32> to vector<8x128xf32>
    %24 = arith.mulf %3, %23 : vector<8x128xf32>
    %25 = vector.broadcast %22 : vector<1x128xf32> to vector<8x128xf32>
    %26 = arith.addf %24, %25 : vector<8x128xf32>
    %cst_12 = arith.constant 0.000000e+00 : f32
    %27 = vector.broadcast %cst_12 : f32 to vector<8x128xf32>
    %28 = arith.maximumf %26, %27 : vector<8x128xf32>
    %c32 = arith.constant 32 : index
    %c0_13 = arith.constant 0 : index
    %29 = vector.load %arg1[%c32, %c0_13] : memref<240x128xf32, #tpu.memory_space<vmem>>, vector<64x128xf32>
    %30 = vector.extract_strided_slice %28 {offsets = [0, 0], sizes = [8, 64], strides = [1, 1]} : vector<8x128xf32> to vector<8x64xf32>
    %cst_14 = arith.constant dense<0.000000e+00> : vector<8x128xf32>
    %31 = tpu.matmul %30, %29, %cst_14 {dimension_numbers = #tpu.dot_dimension_numbers<[1], [0], [0], [1], [0, 0, 1, 1], [], []>} : vector<8x64xf32>, vector<64x128xf32>, vector<8x128xf32> -> vector<8x128xf32>
    %c7 = arith.constant 7 : index
    %c0_15 = arith.constant 0 : index
    %32 = vector.load %arg2[%c7, %c0_15] : memref<16x128xf32, #tpu.memory_space<vmem>>, vector<1x128xf32>
    %c11 = arith.constant 11 : index
    %c0_16 = arith.constant 0 : index
    %33 = vector.load %arg2[%c11, %c0_16] : memref<16x128xf32, #tpu.memory_space<vmem>>, vector<1x128xf32>
    %cst_17 = arith.constant dense<0.000000e+00> : vector<1x128xf32>
    %34 = tpu.matmul %0, %31, %cst_17 {dimension_numbers = #tpu.dot_dimension_numbers<[1], [0], [0], [1], [0, 0, 1, 1], [], []>} : vector<1x8xf32>, vector<8x128xf32>, vector<1x128xf32> -> vector<1x128xf32>
    %35 = arith.mulf %31, %31 : vector<8x128xf32>
    %cst_18 = arith.constant dense<0.000000e+00> : vector<1x128xf32>
    %36 = tpu.matmul %0, %35, %cst_18 {dimension_numbers = #tpu.dot_dimension_numbers<[1], [0], [0], [1], [0, 0, 1, 1], [], []>} : vector<1x8xf32>, vector<8x128xf32>, vector<1x128xf32> -> vector<1x128xf32>
    %cst_19 = arith.constant 1.250000e-01 : f32
    %37 = vector.broadcast %cst_19 : f32 to vector<1x128xf32>
    %38 = arith.mulf %34, %37 : vector<1x128xf32>
    %cst_20 = arith.constant 1.250000e-01 : f32
    %39 = vector.broadcast %cst_20 : f32 to vector<1x128xf32>
    %40 = arith.mulf %36, %39 : vector<1x128xf32>
    %41 = arith.mulf %38, %38 : vector<1x128xf32>
    %42 = arith.subf %40, %41 : vector<1x128xf32>
    %cst_21 = arith.constant 0.000000e+00 : f32
    %43 = vector.broadcast %cst_21 : f32 to vector<1x128xf32>
    %44 = arith.maximumf %42, %43 : vector<1x128xf32>
    %cst_22 = arith.constant 9.99999974E-6 : f32
    %45 = vector.broadcast %cst_22 : f32 to vector<1x128xf32>
    %46 = arith.addf %44, %45 : vector<1x128xf32>
    %47 = math.rsqrt %46 : vector<1x128xf32>
    %48 = arith.mulf %32, %47 : vector<1x128xf32>
    %49 = arith.mulf %38, %48 : vector<1x128xf32>
    %50 = arith.subf %33, %49 : vector<1x128xf32>
    %51 = vector.broadcast %48 : vector<1x128xf32> to vector<8x128xf32>
    %52 = arith.mulf %31, %51 : vector<8x128xf32>
    %53 = vector.broadcast %50 : vector<1x128xf32> to vector<8x128xf32>
    %54 = arith.addf %52, %53 : vector<8x128xf32>
    %cst_23 = arith.constant 0.000000e+00 : f32
    %55 = vector.broadcast %cst_23 : f32 to vector<8x128xf32>
    %56 = arith.maximumf %54, %55 : vector<8x128xf32>
    %c96 = arith.constant 96 : index
    %c0_24 = arith.constant 0 : index
    %57 = vector.load %arg1[%c96, %c0_24] : memref<240x128xf32, #tpu.memory_space<vmem>>, vector<32x128xf32>
    %58 = vector.extract_strided_slice %56 {offsets = [0, 0], sizes = [8, 32], strides = [1, 1]} : vector<8x128xf32> to vector<8x32xf32>
    %cst_25 = arith.constant dense<0.000000e+00> : vector<8x128xf32>
    %59 = tpu.matmul %58, %57, %cst_25 {dimension_numbers = #tpu.dot_dimension_numbers<[1], [0], [0], [1], [0, 0, 1, 1], [], []>} : vector<8x32xf32>, vector<32x128xf32>, vector<8x128xf32> -> vector<8x128xf32>
    %c2 = arith.constant 2 : index
    %c0_26 = arith.constant 0 : index
    %60 = vector.load %arg2[%c2, %c0_26] : memref<16x128xf32, #tpu.memory_space<vmem>>, vector<1x128xf32>
    %61 = vector.broadcast %60 : vector<1x128xf32> to vector<8x128xf32>
    %62 = arith.addf %59, %61 : vector<8x128xf32>
    %c128 = arith.constant 128 : index
    %c0_27 = arith.constant 0 : index
    %63 = vector.load %arg1[%c128, %c0_27] : memref<240x128xf32, #tpu.memory_space<vmem>>, vector<16x128xf32>
    %64 = vector.extract_strided_slice %62 {offsets = [0, 0], sizes = [8, 16], strides = [1, 1]} : vector<8x128xf32> to vector<8x16xf32>
    %cst_28 = arith.constant dense<0.000000e+00> : vector<8x128xf32>
    %65 = tpu.matmul %64, %63, %cst_28 {dimension_numbers = #tpu.dot_dimension_numbers<[1], [0], [0], [1], [0, 0, 1, 1], [], []>} : vector<8x16xf32>, vector<16x128xf32>, vector<8x128xf32> -> vector<8x128xf32>
    %c8 = arith.constant 8 : index
    %c0_29 = arith.constant 0 : index
    %66 = vector.load %arg2[%c8, %c0_29] : memref<16x128xf32, #tpu.memory_space<vmem>>, vector<1x128xf32>
    %c12 = arith.constant 12 : index
    %c0_30 = arith.constant 0 : index
    %67 = vector.load %arg2[%c12, %c0_30] : memref<16x128xf32, #tpu.memory_space<vmem>>, vector<1x128xf32>
    %cst_31 = arith.constant dense<0.000000e+00> : vector<1x128xf32>
    %68 = tpu.matmul %0, %65, %cst_31 {dimension_numbers = #tpu.dot_dimension_numbers<[1], [0], [0], [1], [0, 0, 1, 1], [], []>} : vector<1x8xf32>, vector<8x128xf32>, vector<1x128xf32> -> vector<1x128xf32>
    %69 = arith.mulf %65, %65 : vector<8x128xf32>
    %cst_32 = arith.constant dense<0.000000e+00> : vector<1x128xf32>
    %70 = tpu.matmul %0, %69, %cst_32 {dimension_numbers = #tpu.dot_dimension_numbers<[1], [0], [0], [1], [0, 0, 1, 1], [], []>} : vector<1x8xf32>, vector<8x128xf32>, vector<1x128xf32> -> vector<1x128xf32>
    %cst_33 = arith.constant 1.250000e-01 : f32
    %71 = vector.broadcast %cst_33 : f32 to vector<1x128xf32>
    %72 = arith.mulf %68, %71 : vector<1x128xf32>
    %cst_34 = arith.constant 1.250000e-01 : f32
    %73 = vector.broadcast %cst_34 : f32 to vector<1x128xf32>
    %74 = arith.mulf %70, %73 : vector<1x128xf32>
    %75 = arith.mulf %72, %72 : vector<1x128xf32>
    %76 = arith.subf %74, %75 : vector<1x128xf32>
    %cst_35 = arith.constant 0.000000e+00 : f32
    %77 = vector.broadcast %cst_35 : f32 to vector<1x128xf32>
    %78 = arith.maximumf %76, %77 : vector<1x128xf32>
    %cst_36 = arith.constant 9.99999974E-6 : f32
    %79 = vector.broadcast %cst_36 : f32 to vector<1x128xf32>
    %80 = arith.addf %78, %79 : vector<1x128xf32>
    %81 = math.rsqrt %80 : vector<1x128xf32>
    %82 = arith.mulf %66, %81 : vector<1x128xf32>
    %83 = arith.mulf %72, %82 : vector<1x128xf32>
    %84 = arith.subf %67, %83 : vector<1x128xf32>
    %85 = vector.broadcast %82 : vector<1x128xf32> to vector<8x128xf32>
    %86 = arith.mulf %65, %85 : vector<8x128xf32>
    %87 = vector.broadcast %84 : vector<1x128xf32> to vector<8x128xf32>
    %88 = arith.addf %86, %87 : vector<8x128xf32>
    %cst_37 = arith.constant 0.000000e+00 : f32
    %89 = vector.broadcast %cst_37 : f32 to vector<8x128xf32>
    %90 = arith.maximumf %88, %89 : vector<8x128xf32>
    %c144 = arith.constant 144 : index
    %c0_38 = arith.constant 0 : index
    %91 = vector.load %arg1[%c144, %c0_38] : memref<240x128xf32, #tpu.memory_space<vmem>>, vector<32x128xf32>
    %92 = vector.extract_strided_slice %90 {offsets = [0, 0], sizes = [8, 32], strides = [1, 1]} : vector<8x128xf32> to vector<8x32xf32>
    %cst_39 = arith.constant dense<0.000000e+00> : vector<8x128xf32>
    %93 = tpu.matmul %92, %91, %cst_39 {dimension_numbers = #tpu.dot_dimension_numbers<[1], [0], [0], [1], [0, 0, 1, 1], [], []>} : vector<8x32xf32>, vector<32x128xf32>, vector<8x128xf32> -> vector<8x128xf32>
    %c9 = arith.constant 9 : index
    %c0_40 = arith.constant 0 : index
    %94 = vector.load %arg2[%c9, %c0_40] : memref<16x128xf32, #tpu.memory_space<vmem>>, vector<1x128xf32>
    %c13 = arith.constant 13 : index
    %c0_41 = arith.constant 0 : index
    %95 = vector.load %arg2[%c13, %c0_41] : memref<16x128xf32, #tpu.memory_space<vmem>>, vector<1x128xf32>
    %cst_42 = arith.constant dense<0.000000e+00> : vector<1x128xf32>
    %96 = tpu.matmul %0, %93, %cst_42 {dimension_numbers = #tpu.dot_dimension_numbers<[1], [0], [0], [1], [0, 0, 1, 1], [], []>} : vector<1x8xf32>, vector<8x128xf32>, vector<1x128xf32> -> vector<1x128xf32>
    %97 = arith.mulf %93, %93 : vector<8x128xf32>
    %cst_43 = arith.constant dense<0.000000e+00> : vector<1x128xf32>
    %98 = tpu.matmul %0, %97, %cst_43 {dimension_numbers = #tpu.dot_dimension_numbers<[1], [0], [0], [1], [0, 0, 1, 1], [], []>} : vector<1x8xf32>, vector<8x128xf32>, vector<1x128xf32> -> vector<1x128xf32>
    %cst_44 = arith.constant 1.250000e-01 : f32
    %99 = vector.broadcast %cst_44 : f32 to vector<1x128xf32>
    %100 = arith.mulf %96, %99 : vector<1x128xf32>
    %cst_45 = arith.constant 1.250000e-01 : f32
    %101 = vector.broadcast %cst_45 : f32 to vector<1x128xf32>
    %102 = arith.mulf %98, %101 : vector<1x128xf32>
    %103 = arith.mulf %100, %100 : vector<1x128xf32>
    %104 = arith.subf %102, %103 : vector<1x128xf32>
    %cst_46 = arith.constant 0.000000e+00 : f32
    %105 = vector.broadcast %cst_46 : f32 to vector<1x128xf32>
    %106 = arith.maximumf %104, %105 : vector<1x128xf32>
    %cst_47 = arith.constant 9.99999974E-6 : f32
    %107 = vector.broadcast %cst_47 : f32 to vector<1x128xf32>
    %108 = arith.addf %106, %107 : vector<1x128xf32>
    %109 = math.rsqrt %108 : vector<1x128xf32>
    %110 = arith.mulf %94, %109 : vector<1x128xf32>
    %111 = arith.mulf %100, %110 : vector<1x128xf32>
    %112 = arith.subf %95, %111 : vector<1x128xf32>
    %113 = vector.broadcast %110 : vector<1x128xf32> to vector<8x128xf32>
    %114 = arith.mulf %93, %113 : vector<8x128xf32>
    %115 = vector.broadcast %112 : vector<1x128xf32> to vector<8x128xf32>
    %116 = arith.addf %114, %115 : vector<8x128xf32>
    %cst_48 = arith.constant 0.000000e+00 : f32
    %117 = vector.broadcast %cst_48 : f32 to vector<8x128xf32>
    %118 = arith.maximumf %116, %117 : vector<8x128xf32>
    %c176 = arith.constant 176 : index
    %c0_49 = arith.constant 0 : index
    %119 = vector.load %arg1[%c176, %c0_49] : memref<240x128xf32, #tpu.memory_space<vmem>>, vector<64x128xf32>
    %120 = vector.extract_strided_slice %118 {offsets = [0, 0], sizes = [8, 64], strides = [1, 1]} : vector<8x128xf32> to vector<8x64xf32>
    %cst_50 = arith.constant dense<0.000000e+00> : vector<8x128xf32>
    %121 = tpu.matmul %120, %119, %cst_50 {dimension_numbers = #tpu.dot_dimension_numbers<[1], [0], [0], [1], [0, 0, 1, 1], [], []>} : vector<8x64xf32>, vector<64x128xf32>, vector<8x128xf32> -> vector<8x128xf32>
    %c5 = arith.constant 5 : index
    %c0_51 = arith.constant 0 : index
    %122 = vector.load %arg2[%c5, %c0_51] : memref<16x128xf32, #tpu.memory_space<vmem>>, vector<1x128xf32>
    %123 = vector.broadcast %122 : vector<1x128xf32> to vector<8x128xf32>
    %124 = arith.addf %121, %123 : vector<8x128xf32>
    %125 = vector.extract_strided_slice %124 {offsets = [0, 0], sizes = [8, 32], strides = [1, 1]} : vector<8x128xf32> to vector<8x32xf32>
    %c0_52 = arith.constant 0 : index
    %c0_53 = arith.constant 0 : index
    %126 = vector.load %arg3[%c0_52, %c0_53] : memref<8x32xf32, #tpu.memory_space<vmem>>, vector<8x32xf32>
    tpu.vector_store %arg3[%c0_52, %c0_53], %125 {strides = array<i32>} : memref<8x32xf32, #tpu.memory_space<vmem>>, vector<8x32xf32>,
    return
  }
}

</mosaic_0001>

<bundles_post_ra>
// kernel: autoencoder_forward.1
= control target key start
LH: loop header
LB: loop body
LE: loop exit
PB: predicated region body
PF: predicated region fallthrough
CT: control target
= control target key end

     0   :  { %8 = vsyncpa [#allocation3], 0  ;;  %s1723_s0 = inlined_call_operand.hbm [shape: f32[8,32], index: 0, kind: input, shape index: {}]   ;;  %s1724_s1 = inlined_call_operand.hbm [shape: f32[240,128], index: 1, kind: input, shape index: {}]   ;;  %s1725_s2 = inlined_call_operand.hbm [shape: f32[16,128], index: 2, kind: input, shape index: {}]   ;;  %s1726_s3 = inlined_call_operand.hbm [shape: f32[8,32], index: 3, kind: output, shape index: {}]  }
   0x1   :  { %9 = vsyncpa [#allocation6], 0 }
   0x2   :  { %10 = vsyncpa [#allocation4], 0  ;;  %s1556_s12 = smov [#allocation5]   ;;  %s1462_s16 = scalar_lea.hbm %s1724_s1, 3840 }
   0x3   :  { %s26_s13 = sshll.u32 %s1556_s12, 4  ;;  %p1463_p0 = scmp.ne.s32.totalorder %s1724_s1, %s1462_s16  ;;  %s27_s13 = int_to_ptr.vmem [resolvable:$true] %s26_s13 }
   0x4   :  { %p1466_p1 = scmp.lt.u32.totalorder %s1462_s16, %s1724_s1 }
   0x6   :  { %p1468_p2 = pnand %p1466_p1, %p1463_p0 }
   0x8   :  { %1471 = shalt.err (!%p1468_p2)
}
   0x9   :  { %s1472_s21 = scalar_lea.vmem %s27_s13, 3840  ;;  %p1477_p4 = scmp.lt.s32.totalorder %s27_s13, %s27_s13 }
   0xa   :  { %p1473_p3 = scmp.ne.s32.totalorder %s27_s13, %s1472_s21  ;;  %p1478_p5 = scmp.lt.s32.totalorder %s1472_s21, %s1472_s21 }
   0xc   :  { %p1479_p6 = por %p1478_p5, %p1477_p4 }
   0xe   :  { %p1480_p7 = pnand %p1479_p6, %p1473_p3 }
  0x10   :  { %1483 = shalt.err (!%p1480_p7)
}
  0x11   :  { %s1557_s22 = smov 128   ;;  %s1558_s23 = smov 8  }
  0x12   :  { %32 = dma.hbm_to_vmem [thread:$0]  %s1724_s1, 3840, %s27_s13, [#allocation6], %s1557_s22, %s1557_s22, %s1558_s23  }
  0x13   :  { %s1559_s26 = smov [#allocation2]   ;;  %s1560_s28 = smov [#allocation7]  }
  0x14   :  { %s17_s27 = sshll.u32 %s1559_s26, 4  ;;  %s38_s29 = sshll.u32 %s1560_s28, 4  ;;  %s18_s27 = int_to_ptr.vmem [resolvable:$true] %s17_s27  ;;  %s39_s29 = int_to_ptr.vmem [resolvable:$true] %s38_s29 }
  0x15   :  { %s1484_s5 = scalar_lea.hbm %s1723_s0, 128 }
  0x16   :  { %p1485_p8 = scmp.ne.s32.totalorder %s1723_s0, %s1484_s5  ;;  %p1488_p9 = scmp.lt.u32.totalorder %s1484_s5, %s1723_s0 }
  0x18   :  { %p1490_p10 = pnand %p1488_p9, %p1485_p8 }
  0x1a   :  { %1493 = shalt.err (!%p1490_p10)
}
  0x1b   :  { %s1494_s1 = scalar_lea.vmem %s18_s27, 128  ;;  %p1499_p12 = scmp.lt.s32.totalorder %s18_s27, %s18_s27 }
  0x1c   :  { %p1495_p11 = scmp.ne.s32.totalorder %s18_s27, %s1494_s1  ;;  %p1500_p13 = scmp.lt.s32.totalorder %s1494_s1, %s1494_s1 }
  0x1e   :  { %p1501_p0 = por %p1500_p13, %p1499_p12 }
  0x20   :  { %p1502_p1 = pnand %p1501_p0, %p1495_p11 }
  0x22   :  { %1505 = shalt.err (!%p1502_p1)
}
  0x23   :  { %20 = dma.hbm_to_vmem [thread:$0]  %s1723_s0, 128, %s18_s27, [#allocation3]  }
  0x24   :  { %s1506_s14 = scalar_lea.hbm %s1725_s2, 256 }
  0x25   :  { %p1507_p2 = scmp.ne.s32.totalorder %s1725_s2, %s1506_s14  ;;  %p1510_p3 = scmp.lt.u32.totalorder %s1506_s14, %s1725_s2 }
  0x27   :  { %p1512_p4 = pnand %p1510_p3, %p1507_p2 }
  0x29   :  { %1515 = shalt.err (!%p1512_p4)
}
  0x2a   :  { %s1516_s19 = scalar_lea.vmem %s39_s29, 256  ;;  %p1521_p6 = scmp.lt.s32.totalorder %s39_s29, %s39_s29 }
  0x2b   :  { %p1517_p5 = scmp.ne.s32.totalorder %s39_s29, %s1516_s19  ;;  %p1522_p7 = scmp.lt.s32.totalorder %s1516_s19, %s1516_s19 }
  0x2d   :  { %p1523_p8 = por %p1522_p7, %p1521_p6 }
  0x2f   :  { %p1524_p9 = pnand %p1523_p8, %p1517_p5 }
  0x31   :  { %1527 = shalt.err (!%p1524_p9)
}
  0x32   :  { %44 = dma.hbm_to_vmem [thread:$0]  %s1725_s2, 256, %s39_s29, [#allocation6], %s1557_s22, %s1557_s22, %s1558_s23  }
  0x33   :  { %1550 = dma.done.wait [#allocation3], 128  }
  0x34   :  { %1551 = vsyncadd [#allocation3], 4294967168 }
  0x35   :  { %1552 = dma.done.wait [#allocation6], 4096  }
  0x36   :  { %1553 = vsyncadd [#allocation6], 4294963200  ;;  %v1561_v0 = vmov 0.0|0.0   ;;  %vm1562_vm0 = vmmov 0   ;;  %v1563_v1 = vmov 0.0   ;;  %v55_v2 = vld [vmem:[#allocation5] sm:$0xff]  ;;  %v290_v35 = vlaneseq }
  0x37   :  { %1399 = vmatprep.subr.bf16.mxu0 %v1561_v0  ;;  %1289 = vmatprep.mubr.msk.f32.mxu0 %vm1562_vm0, %v1563_v1  ;;  %v56_v3 = vld [vmem:[#allocation5 + $0x8] sm:$0xff]  ;;  %v57_v4 = vld [vmem:[#allocation5 + $0x10] sm:$0xff]  ;;  %v58_v6 = vld [vmem:[#allocation5 + $0x18] sm:$0xff]  ;;  %vm59_vm1 = vcmask 261120   ;;  %vm135_vm2 = vcmask 64512   ;;  %v1564_v12 = vmov 1.0  }
  0x38   :  { %1292 = vmatprep.subr.mxu1 %v1563_v1  ;;  %1294 = vmatprep.mubr.msk.f32.mxu1 %vm1562_vm0, %v1563_v1  ;;  %v1400_v5 = vpack.c.bf16 %v56_v3, %v55_v2  ;;  %v1403_v7 = vpack.c.bf16 %v58_v6, %v57_v4  ;;  %v54_v8 = vld [vmem:[#allocation2] sm:$0xff]  ;;  %v301_v13 = vld [vmem:[#allocation5 + $0x20] sm:$0xff]  ;;  %v302_v14 = vld [vmem:[#allocation5 + $0x28] sm:$0xff]  ;;  %v291_v36 = vshrl.u32 %v290_v35, 7  ;;  %vm309_vm3 = vcmask 523264   ;;  %s1565_s2 = smov [#allocation8]  }
  0x39   :  { %v1406_v15 = vpack.c.bf16 %v302_v14, %v301_v13  ;;  %v303_v16 = vld [vmem:[#allocation5 + $0x30] sm:$0xff]  ;;  %v304_v17 = vld [vmem:[#allocation5 + $0x38] sm:$0xff]  ;;  %v305_v19 = vld [vmem:[#allocation5 + $0x40] sm:$0xff]  ;;  %vm631_vm4 = vcmask 130048   ;;  %s1203_s21 = sshll.u32 %s1565_s2, 4  ;;  %s1204_s21 = int_to_ptr.vmem [resolvable:$true] %s1203_s21 }
  0x3a   :  { %1401 = vmatpush3.bf16.msra.mxu0 %v1400_v5  ;;  %v1409_v18 = vpack.c.bf16 %v304_v17, %v303_v16  ;;  %v306_v20 = vld [vmem:[#allocation5 + $0x48] sm:$0xff]  ;;  %v307_v21 = vld [vmem:[#allocation5 + $0x50] sm:$0xff]  ;;  %v308_v23 = vld [vmem:[#allocation5 + $0x58] sm:$0xff]  ;;  %v1653_v38 = vsub.s32 0, %v291_v36  ;;  %s1528_s22 = scalar_lea.vmem %s1204_s21, 128  ;;  %p1533_p11 = scmp.lt.s32.totalorder %s1204_s21, %s1204_s21 }
  0x3b   :  { %1402 = vmatprep.subr.bf16.mxu0 %v1561_v0  ;;  %v1412_v22 = vpack.c.bf16 %v306_v20, %v305_v19  ;;  %v1415_v24 = vpack.c.bf16 %v308_v23, %v307_v21  ;;  %v133_v37 = vld [vmem:[#allocation7 + $0x6] sm:$0x1]  ;;  %v134_v41 = vld [vmem:[#allocation7 + $0xa] sm:$0x1]  ;;  %v547_v52 = vld [vmem:[#allocation5 + $0x60] sm:$0xff]  ;;  %p1529_p10 = scmp.ne.s32.totalorder %s1204_s21, %s1528_s22  ;;  %p1534_p12 = scmp.lt.s32.totalorder %s1528_s22, %s1528_s22 }
  0x3c   :  { %v548_v53 = vld [vmem:[#allocation5 + $0x68] sm:$0xff]  ;;  %v549_v54 = vld [vmem:[#allocation5 + $0x70] sm:$0xff]  ;;  %v550_v56 = vld [vmem:[#allocation5 + $0x78] sm:$0xff] }
  0x3d   :  { %v1418_v55 = vpack.c.bf16 %v548_v53, %v547_v52  ;;  %v1421_v57 = vpack.c.bf16 %v550_v56, %v549_v54  ;;  %v383_v6 = vld [vmem:[#allocation7 + $0x7] sm:$0x1]  ;;  %v630_v19 = vld [vmem:[#allocation5 + $0x88] sm:$0xff]  ;;  %v1219_v21 = vld [vmem:[#allocation7 + $0x2] ss:$0 sm:$0xff]  ;;  %p1535_p13 = por %p1534_p12, %p1533_p11 }
  0x3e   :  { %1404 = vmatpush3.bf16.msra.mxu0 %v1403_v7 }
  0x3f   :  { %1321 = vmatprep.subr.mxu0 %v1563_v1  ;;  %p1536_p0 = pnand %p1535_p13, %p1529_p10 }
  0x41   :  { %1290 = vmatmul.mubr.msk.f32.vlgmr.msra.gmra.mrb[0].mxu0 %vm59_vm1, %v54_v8 }
  0x42   :  { %1323 = vmatprep.mubr.msk.f32.mxu0 %vm1562_vm0, %v1563_v1 }
 0x114   :  { %v129_v9 = vpop.f32.mrb[0].mxu0 }
 0x115   :  { %v209_v10 = vmul.f32 %v129_v9, %v129_v9  ;;  %v1291_v11 = vpop.f32.mrb[1].mxu0  ;;  %1293 = vmatpush3.msra.mxu1 %v129_v9 }
 0x116   :  { %1295 = vmatmul.mubr.msk.f32.vlgmr.msra.gmra.mrb[0].mxu1 %vm135_vm2, %v1564_v12  ;;  %1297 = vmatprep.subr.mxu1 %v1563_v1 }
 0x117   :  { %1298 = vmatpush3.msra.mxu1 %v209_v10  ;;  %1299 = vmatprep.mubr.msk.f32.mxu1 %vm1562_vm0, %v1563_v1 }
 0x118   :  { %1405 = vmatprep.subr.bf16.mxu1 %v1561_v0 }
 0x11a   :  { %1300 = vmatmul.mubr.msk.f32.vlgmr.msra.gmra.mrb[2].mxu1 %vm135_vm2, %v1564_v12 }
 0x11b   :  { %1318 = vmatprep.mubr.msk.f32.mxu1 %vm1562_vm0, %v1563_v1  ;;  %1407 = vmatpush3.bf16.msra.mxu1 %v1406_v15 }
 0x11c   :  { %1408 = vmatprep.subr.bf16.mxu1 %v1561_v0 }
 0x11f   :  { %1410 = vmatpush3.bf16.msra.mxu1 %v1409_v18  ;;  %v629_v18 = vld [vmem:[#allocation5 + $0x80] sm:$0xff] }
 0x120   :  { %1411 = vmatprep.subr.bf16.mxu1 %v1561_v0  ;;  %v1424_v20 = vpack.c.bf16 %v630_v19, %v629_v18  ;;  %v946_v18 = vld [vmem:[#allocation7 + $0x9] sm:$0x1] }
 0x123   :  { %1413 = vmatpush3.bf16.msra.mxu1 %v1412_v22 }
 0x124   :  { %1414 = vmatprep.subr.bf16.mxu1 %v1561_v0 }
 0x127   :  { %1416 = vmatpush3.bf16.msra.mxu1 %v1415_v24 }
 0x128   :  { %1417 = vmatprep.subr.bf16.mxu1 %v1561_v0 }
 0x1e9   :  { %v205_v25 = vpop.f32.mrb[0].mxu1 }
 0x1ea   :  { %v280_v26 = vmul.f32 0.125, %v205_v25  ;;  %v1296_v27 = vpop.f32.mrb[1].mxu1 }
 0x1ec   :  { %v282_v29 = vmul.f32 %v280_v26, %v280_v26 }
 0x1ed   :  { %v276_v28 = vpop.f32.mrb[2].mxu1 }
 0x1ee   :  { %v281_v30 = vmul.f32 0.125, %v276_v28  ;;  %v1301_v31 = vpop.f32.mrb[3].mxu1  ;;  %v869_v28 = vld [vmem:[#allocation5 + $0x90] sm:$0xff] }
 0x1f0   :  { %v283_v32 = vsub.f32 %v281_v30, %v282_v29  ;;  %v870_v29 = vld [vmem:[#allocation5 + $0x98] sm:$0xff]  ;;  %v871_v30 = vld [vmem:[#allocation5 + $0xa0] sm:$0xff] }
 0x1f1   :  { %v1427_v31 = vpack.c.bf16 %v870_v29, %v869_v28  ;;  %v1227_v28 = vld [vmem:[#allocation7 + $0x5] ss:$0 sm:$0xff] }
 0x1f2   :  { %v284_v33 = vmax.f32 %v283_v32, 0.0  ;;  %v872_v32 = vld [vmem:[#allocation5 + $0xa8] sm:$0xff] }
 0x1f4   :  { %v285_v34 = vadd.f32 1e-05, %v284_v33  ;;  %v1430_v33 = vpack.c.bf16 %v872_v32, %v871_v30 }
 0x1f6   :  { %1454 = vrsqrt.f32 %v285_v34 }
 0x200   :  { %v1455_v39 = vpop.eup %1454 }
 0x201   :  { %v287_v40 = vmul.f32 %v1455_v39, %v133_v37 }
 0x203   :  { %v288_v42 = vmul.f32 %v287_v40, %v280_v26  ;;  %v293_v43 = vrot.slane %v287_v40, %v1653_v38 }
 0x205   :  { %v289_v44 = vsub.f32 %v134_v41, %v288_v42  ;;  %v294_v45 = vmul.f32 %v293_v43, %v129_v9  ;;  %v384_v9 = vld [vmem:[#allocation7 + $0xb] sm:$0x1] }
 0x207   :  { %v298_v46 = vrot.slane %v289_v44, %v1653_v38 }
 0x209   :  { %v299_v47 = vadd.f32 %v298_v46, %v294_v45  ;;  %v705_v45 = vld [vmem:[#allocation7 + $0x8] sm:$0x1] }
 0x20b   :  { %v300_v48 = vmax.f32 %v299_v47, 0.0 }
 0x20d   :  { %1319 = vmatmul.mubr.msk.f32.vlgmr.msra.gmra.mrb[4].mxu1 %vm309_vm3, %v300_v48  ;;  %v706_v48 = vld [vmem:[#allocation7 + $0xc] sm:$0x1] }
 0x20e   :  { %1339 = vmatprep.mubr.msk.f32.mxu1 %vm1562_vm0, %v1563_v1  ;;  %1419 = vmatpush3.bf16.msra.mxu1 %v1418_v55 }
 0x20f   :  { %1420 = vmatprep.subr.bf16.mxu1 %v1561_v0 }
 0x212   :  { %1422 = vmatpush3.bf16.msra.mxu1 %v1421_v57 }
 0x213   :  { %1423 = vmatprep.subr.bf16.mxu1 %v1561_v0 }
 0x2e0   :  { %v379_v49 = vpop.f32.mrb[4].mxu1 }
 0x2e1   :  { %v455_v50 = vmul.f32 %v379_v49, %v379_v49  ;;  %v1320_v51 = vpop.f32.mrb[5].mxu1  ;;  %1322 = vmatpush3.msra.mxu0 %v379_v49 }
 0x2e2   :  { %1324 = vmatmul.mubr.msk.f32.vlgmr.msra.gmra.mrb[2].mxu0 %vm135_vm2, %v1564_v12  ;;  %1326 = vmatprep.subr.mxu0 %v1563_v1 }
 0x2e3   :  { %1327 = vmatpush3.msra.mxu0 %v455_v50  ;;  %1328 = vmatprep.mubr.msk.f32.mxu0 %vm1562_vm0, %v1563_v1 }
 0x2e4   :  { %1349 = vmatprep.subr.mxu0 %v1563_v1 }
 0x2e6   :  { %1329 = vmatmul.mubr.msk.f32.vlgmr.msra.gmra.mrb[4].mxu0 %vm135_vm2, %v1564_v12 }
 0x2e7   :  { %1351 = vmatprep.mubr.msk.f32.mxu0 %vm1562_vm0, %v1563_v1 }
 0x3b5   :  { %v451_v58 = vpop.f32.mrb[2].mxu0 }
 0x3b6   :  { %v526_v59 = vmul.f32 0.125, %v451_v58  ;;  %v1325_v60 = vpop.f32.mrb[3].mxu0 }
 0x3b7   :  { %v1111_v60 = vld [vmem:[#allocation5 + $0xb8] sm:$0xff] }
 0x3b8   :  { %v528_v62 = vmul.f32 %v526_v59, %v526_v59 }
 0x3b9   :  { %v522_v61 = vpop.f32.mrb[4].mxu0 }
 0x3ba   :  { %v527_v63 = vmul.f32 0.125, %v522_v61  ;;  %v1330_v2 = vpop.f32.mrb[5].mxu0 }
 0x3bc   :  { %v529_v3 = vsub.f32 %v527_v63, %v528_v62  ;;  %v1112_v62 = vld [vmem:[#allocation5 + $0xc0] sm:$0xff]  ;;  %v1113_v63 = vld [vmem:[#allocation5 + $0xc8] sm:$0xff] }
 0x3bd   :  { %v1436_v2 = vpack.c.bf16 %v1113_v63, %v1112_v62 }
 0x3be   :  { %v530_v4 = vmax.f32 %v529_v3, 0.0  ;;  %v1114_v3 = vld [vmem:[#allocation5 + $0xd0] sm:$0xff] }
 0x3c0   :  { %v531_v5 = vadd.f32 1e-05, %v530_v4  ;;  %v1115_v4 = vld [vmem:[#allocation5 + $0xd8] sm:$0xff] }
 0x3c2   :  { %1456 = vrsqrt.f32 %v531_v5  ;;  %v1116_v5 = vld [vmem:[#allocation5 + $0xe0] sm:$0xff] }
 0x3cc   :  { %v1457_v7 = vpop.eup %1456 }
 0x3cd   :  { %v533_v8 = vmul.f32 %v1457_v7, %v383_v6  ;;  %v1439_v6 = vpack.c.bf16 %v1115_v4, %v1114_v3 }
 0x3cf   :  { %v534_v10 = vmul.f32 %v533_v8, %v526_v59  ;;  %v539_v11 = vrot.slane %v533_v8, %v1653_v38  ;;  %v1110_v59 = vld [vmem:[#allocation5 + $0xb0] sm:$0xff] }
 0x3d0   :  { %v1433_v61 = vpack.c.bf16 %v1111_v60, %v1110_v59 }
 0x3d1   :  { %v535_v13 = vsub.f32 %v384_v9, %v534_v10  ;;  %v540_v14 = vmul.f32 %v539_v11, %v379_v49 }
 0x3d3   :  { %v544_v15 = vrot.slane %v535_v13, %v1653_v38 }
 0x3d5   :  { %v545_v16 = vadd.f32 %v544_v15, %v540_v14 }
 0x3d7   :  { %v546_v17 = vmax.f32 %v545_v16, 0.0 }
 0x3d9   :  { %1340 = vmatmul.mubr.msk.f32.vlgmr.msra.gmra.mrb[6].mxu1 %vm59_vm1, %v546_v17 }
 0x3da   :  { %1346 = vmatprep.mubr.msk.f32.mxu1 %vm1562_vm0, %v1563_v1  ;;  %1425 = vmatpush3.bf16.msra.mxu1 %v1424_v20 }
 0x3db   :  { %1354 = vmatprep.subr.mxu1 %v1563_v1 }
 0x4ac   :  { %v625_v22 = vpop.f32.mrb[6].mxu1 }
 0x4ad   :  { %v626_v23 = vadd.f32 %v1219_v21, %v625_v22  ;;  %v1341_v24 = vpop.f32.mrb[7].mxu1  ;;  %v947_v21 = vld [vmem:[#allocation7 + $0xd] sm:$0x1] }
 0x4af   :  { %1347 = vmatmul.mubr.msk.f32.vlgmr.msra.gmra.mrb[8].mxu1 %vm631_vm4, %v626_v23 }
 0x4b0   :  { %1356 = vmatprep.mubr.msk.f32.mxu1 %vm1562_vm0, %v1563_v1 }
 0x582   :  { %v701_v25 = vpop.f32.mrb[8].mxu1 }
 0x583   :  { %v777_v26 = vmul.f32 %v701_v25, %v701_v25  ;;  %v1348_v27 = vpop.f32.mrb[9].mxu1  ;;  %1350 = vmatpush3.msra.mxu0 %v701_v25 }
 0x584   :  { %1352 = vmatmul.mubr.msk.f32.vlgmr.msra.gmra.mrb[6].mxu0 %vm135_vm2, %v1564_v12  ;;  %1426 = vmatprep.subr.bf16.mxu0 %v1561_v0 }
 0x585   :  { %1355 = vmatpush3.msra.mxu1 %v777_v26  ;;  %1367 = vmatprep.mubr.msk.f32.mxu0 %vm1562_vm0, %v1563_v1 }
 0x586   :  { %1357 = vmatmul.mubr.msk.f32.vlgmr.msra.gmra.mrb[10].mxu1 %vm135_vm2, %v1564_v12  ;;  %1370 = vmatprep.subr.mxu1 %v1563_v1 }
 0x587   :  { %1372 = vmatprep.mubr.msk.f32.mxu1 %vm1562_vm0, %v1563_v1  ;;  %1428 = vmatpush3.bf16.msra.mxu0 %v1427_v31 }
 0x588   :  { %1429 = vmatprep.subr.bf16.mxu0 %v1561_v0 }
 0x58b   :  { %1431 = vmatpush3.bf16.msra.mxu0 %v1430_v33 }
 0x58c   :  { %1432 = vmatprep.subr.bf16.mxu0 %v1561_v0 }
 0x657   :  { %v773_v34 = vpop.f32.mrb[6].mxu0 }
 0x658   :  { %v848_v35 = vmul.f32 0.125, %v773_v34  ;;  %v1353_v36 = vpop.f32.mrb[7].mxu0 }
 0x659   :  { %v844_v37 = vpop.f32.mrb[10].mxu1 }
 0x65a   :  { %v850_v39 = vmul.f32 %v848_v35, %v848_v35  ;;  %v849_v40 = vmul.f32 0.125, %v844_v37  ;;  %v1358_v41 = vpop.f32.mrb[11].mxu1 }
 0x65c   :  { %v851_v42 = vsub.f32 %v849_v40, %v850_v39 }
 0x65e   :  { %v852_v43 = vmax.f32 %v851_v42, 0.0 }
 0x660   :  { %v853_v44 = vadd.f32 1e-05, %v852_v43 }
 0x662   :  { %1458 = vrsqrt.f32 %v853_v44 }
 0x66c   :  { %v1459_v46 = vpop.eup %1458 }
 0x66d   :  { %v855_v47 = vmul.f32 %v1459_v46, %v705_v45 }
 0x66f   :  { %v856_v49 = vmul.f32 %v855_v47, %v848_v35  ;;  %v861_v50 = vrot.slane %v855_v47, %v1653_v38 }
 0x671   :  { %v857_v51 = vsub.f32 %v706_v48, %v856_v49  ;;  %v862_v52 = vmul.f32 %v861_v50, %v701_v25 }
 0x673   :  { %v866_v53 = vrot.slane %v857_v51, %v1653_v38 }
 0x675   :  { %v867_v54 = vadd.f32 %v866_v53, %v862_v52 }
 0x677   :  { %v868_v55 = vmax.f32 %v867_v54, 0.0 }
 0x679   :  { %1368 = vmatmul.mubr.msk.f32.vlgmr.msra.gmra.mrb[8].mxu0 %vm59_vm1, %v868_v55 }
 0x67a   :  { %1396 = vmatprep.mubr.msk.f32.mxu0 %vm1562_vm0, %v1563_v1  ;;  %1434 = vmatpush3.bf16.msra.mxu0 %v1433_v61 }
 0x67b   :  { %1435 = vmatprep.subr.bf16.mxu0 %v1561_v0 }
 0x67e   :  { %1437 = vmatpush3.bf16.msra.mxu0 %v1436_v2 }
 0x67f   :  { %1438 = vmatprep.subr.bf16.mxu0 %v1561_v0 }
 0x682   :  { %1440 = vmatpush3.bf16.msra.mxu0 %v1439_v6 }
 0x683   :  { %1441 = vmatprep.subr.bf16.mxu0 %v1561_v0 }
 0x74c   :  { %v942_v56 = vpop.f32.mrb[8].mxu0 }
 0x74d   :  { %v1018_v57 = vmul.f32 %v942_v56, %v942_v56  ;;  %v1369_v58 = vpop.f32.mrb[9].mxu0  ;;  %1371 = vmatpush3.msra.mxu1 %v942_v56 }
 0x74e   :  { %1373 = vmatmul.mubr.msk.f32.vlgmr.msra.gmra.mrb[12].mxu1 %vm135_vm2, %v1564_v12  ;;  %1375 = vmatprep.subr.mxu1 %v1563_v1 }
 0x74f   :  { %1376 = vmatpush3.msra.mxu1 %v1018_v57  ;;  %1377 = vmatprep.mubr.msk.f32.mxu1 %vm1562_vm0, %v1563_v1  ;;  %v1117_v1 = vld [vmem:[#allocation5 + $0xe8] sm:$0xff] }
 0x750   :  { %v1442_v7 = vpack.c.bf16 %v1117_v1, %v1116_v5 }
 0x752   :  { %1378 = vmatmul.mubr.msk.f32.vlgmr.msra.gmra.mrb[14].mxu1 %vm135_vm2, %v1564_v12  ;;  %1443 = vmatpush3.bf16.msra.mxu0 %v1442_v7 }
 0x821   :  { %v1014_v12 = vpop.f32.mrb[12].mxu1 }
 0x822   :  { %v1089_v8 = vmul.f32 0.125, %v1014_v12  ;;  %v1374_v9 = vpop.f32.mrb[13].mxu1 }
 0x824   :  { %v1091_v11 = vmul.f32 %v1089_v8, %v1089_v8 }
 0x825   :  { %v1085_v10 = vpop.f32.mrb[14].mxu1 }
 0x826   :  { %v1090_v13 = vmul.f32 0.125, %v1085_v10  ;;  %v1379_v14 = vpop.f32.mrb[15].mxu1 }
 0x828   :  { %v1092_v15 = vsub.f32 %v1090_v13, %v1091_v11 }
 0x82a   :  { %v1093_v16 = vmax.f32 %v1092_v15, 0.0 }
 0x82c   :  { %v1094_v17 = vadd.f32 1e-05, %v1093_v16 }
 0x82e   :  { %1460 = vrsqrt.f32 %v1094_v17 }
 0x838   :  { %v1461_v19 = vpop.eup %1460 }
 0x839   :  { %v1096_v20 = vmul.f32 %v1461_v19, %v946_v18 }
 0x83b   :  { %v1097_v22 = vmul.f32 %v1096_v20, %v1089_v8  ;;  %v1102_v23 = vrot.slane %v1096_v20, %v1653_v38 }
 0x83d   :  { %v1098_v0 = vsub.f32 %v947_v21, %v1097_v22  ;;  %v1103_v24 = vmul.f32 %v1102_v23, %v942_v56 }
 0x83f   :  { %v1107_v25 = vrot.slane %v1098_v0, %v1653_v38 }
 0x841   :  { %v1108_v26 = vadd.f32 %v1107_v25, %v1103_v24 }
 0x843   :  { %v1109_v27 = vmax.f32 %v1108_v26, 0.0 }
 0x845   :  { %1397 = vmatmul.mubr.msk.f32.vlgmr.msra.gmra.mrb[10].mxu0 %vm309_vm3, %v1109_v27 }
 0x918   :  { %v1192_v29 = vpop.f32.mrb[10].mxu0 }
 0x919   :  { %v1193_v30 = vadd.f32 %v1227_v28, %v1192_v29  ;;  %v1398_v31 = vpop.f32.mrb[11].mxu0 }
 0x91b   :  { %1196 = vst.msk [vmem:[#allocation8] sm:$0xff] %vm59_vm1, %v1193_v30 }
 0x91c   :  { %1539 = shalt.err (!%p1536_p0)
}
 0x91d   :  { %s1540_s25 = scalar_lea.hbm %s1726_s3, 128 }
 0x91e   :  { %p1541_p1 = scmp.ne.s32.totalorder %s1726_s3, %s1540_s25  ;;  %p1544_p2 = scmp.lt.u32.totalorder %s1540_s25, %s1726_s3 }
 0x920   :  { %p1546_p3 = pnand %p1544_p2, %p1541_p1 }
 0x922   :  { %1549 = shalt.err (!%p1546_p3)
}
 0x923   :  { %1206 = dma.vmem_to_hbm [thread:$0]  %s1204_s21, 128, %s1726_s3, [#allocation4]  }
 0x924   :  { %1554 = dma.done.wait [#allocation4], 128  }
 0x925   :  { %1555 = vsyncadd [#allocation4], 4294967168 }
 0x926   :  { %1210 = vsyncpa [#allocation3], 1 }
 0x927   :  { %1211 = vsyncpa [#allocation6], 1 }
 0x928   :  { %1212 = vsyncpa [#allocation4], 1 }

</bundles_post_ra>
